<compile_context>
chip_gen: v5e
topology: v5e:2x2
jax: 0.10.0
libtpu: 0.0.40
codegen_flags: <defaults>
</compile_context>

<pallas_src>
import functools

import jax
import jax.numpy as jnp
from jax.experimental import pallas as pl
from jax.experimental.pallas import tpu as pltpu


# Parameter-slab layout (columns of the (rows, 128) f32 slab):
#   rows [0, K*NC)  cols [0, c_hid)        : fused embed+conv weight W1f
#   row  K*NC       cols [0, c_hid)        : b1
#   rows [0, c_hid) cols [64, 64+NC)       : w2
#   row  c_hid      cols [64, 64+NC)       : b2
_W2_COL0 = 64


# ----------------------------------------------------------------------------
# Fused kernel: one-hot im2col + conv + pool + classifier + CE/argmax head.
# Single program over the whole (tiny) batch — everything stays VMEM-resident.
# ----------------------------------------------------------------------------
def fused_bell_kernel(idx_ref, params_ref, out_ref, *, B, L, n_xy, n_ab,
                      c_hid, K):
    BL = B * L
    NC = n_xy * n_ab

    # ---- one-hot im2col slab (BL, K*NC) from pre-shifted combined indices --
    # idx_ref[:, k] already holds the token index seen by conv tap k at each
    # output position (-1 where the tap is out of range -> all-zero one-hot).
    lanes = jax.lax.broadcasted_iota(jnp.int32, (BL, NC), 1)
    oh = [(lanes == idx_ref[:, k:k + 1]).astype(jnp.float32) for k in range(K)]
    slab = jnp.concatenate(oh, axis=1)                       # (BL, K*NC)

    # ---- MXU matmul #1: fused embedding + conv1d (K taps) + bias + ReLU ----
    w1f = params_ref[0:K * NC, 0:c_hid]                      # (K*NC, c_hid)
    b1 = params_ref[K * NC:K * NC + 1, 0:c_hid]              # (1, c_hid)
    h = jnp.maximum(
        jnp.dot(slab, w1f, preferred_element_type=jnp.float32) + b1,
        0.0)                                                 # (BL, c_hid)

    # ---- global average pool: sublane mean reduce per batch element --------
    # (replaces the former pooling matmul; B is static and tiny)
    pooled = jnp.concatenate(
        [jnp.mean(h[b * L:(b + 1) * L, :], axis=0, keepdims=True)
         for b in range(B)], axis=0)                         # (B, c_hid)

    # ---- MXU matmul #2: classifier -----------------------------------------
    w2 = params_ref[0:c_hid, _W2_COL0:_W2_COL0 + NC]         # (c_hid, NC)
    b2 = params_ref[c_hid:c_hid + 1, _W2_COL0:_W2_COL0 + NC] # (1, NC)
    logits = (jnp.dot(pooled, w2, preferred_element_type=jnp.float32)
              + b2)                                          # (B, NC)

    # ---- head: gather(out.reshape(B, n_xy, n_ab), dim=1, index=xy) ---------
    xy2 = idx_ref[0:B, K:K + 1]                              # (B, 1) int32
    ab2 = idx_ref[0:B, K + 1:K + 2]                          # (B, 1) int32

    col = jax.lax.broadcasted_iota(jnp.int32, (B, NC), 1)
    off = col - xy2 * n_ab                                   # within-window idx
    in_win = (off >= 0) & (off < n_ab)

    neg = jnp.float32(-1e30)
    masked = jnp.where(in_win, logits, neg)
    m = jnp.max(masked, axis=1, keepdims=True)               # (B, 1)
    p = jnp.exp(masked - m)                                  # oow lanes -> 0
    lse = m + jnp.log(jnp.sum(p, axis=1, keepdims=True))
    # exactly one column satisfies off == ab2 (and it is inside the window)
    picked = jnp.sum(jnp.where(off == ab2, logits, 0.0),
                     axis=1, keepdims=True)                  # target logit
    loss = jnp.mean(lse - picked, axis=(0, 1), keepdims=True)   # (1, 1)

    # torch.max(out, dim=1): first-occurrence argmax inside the window.
    pred = jnp.min(jnp.where(in_win & (masked == m), off, n_ab),
                   axis=1, keepdims=True)                    # (B, 1)
    correct = (pred == ab2).astype(jnp.float32)              # (B, 1)
    sumc = jnp.sum(correct, axis=(0, 1), keepdims=True)      # (1, 1)

    # ---- per-xy bucket distribution, lane-dense over the full 128 lanes ----
    lanes128 = jax.lax.broadcasted_iota(jnp.int32, (B, 128), 1)
    bmask = (lanes128 == xy2).astype(jnp.float32)            # (B, 128)
    distc = jnp.sum(bmask * correct, axis=0, keepdims=True)  # (1, 128)
    distt = jnp.sum(bmask, axis=0, keepdims=True)            # (1, 128)

    # ---- pack everything into ONE lane-dense (8, 128) store ----------------
    ci = jax.lax.broadcasted_iota(jnp.int32, (1, 128), 1)
    row0 = jnp.where(ci == 0, loss, jnp.where(ci == 1, sumc, 0.0))  # (1, 128)
    out_ref[...] = jnp.concatenate(
        [row0, distc, distt, jnp.zeros((5, 128), jnp.float32)], axis=0)


# ----------------------------------------------------------------------------
# Parameter init (deterministic, synthetic): builds the packed f32 slab.
# ----------------------------------------------------------------------------
def init_params(key, xy_bits=3, ab_bits=1, c_hidden=32, ksize=3):
    n_xy, n_ab = 2 ** xy_bits, 2 ** ab_bits
    num_classes = n_xy * n_ab                # required by the forward reshape
    d_xy, d_ab = xy_bits, ab_bits
    c_in = d_xy + d_ab
    ks = jax.random.split(key, 6)
    emb_xy = jax.random.normal(ks[0], (n_xy, d_xy), jnp.float32)
    emb_ab = jax.random.normal(ks[1], (n_ab, d_ab), jnp.float32)
    w1 = jax.random.normal(ks[2], (ksize, c_in, c_hidden), jnp.float32) * 0.3
    b1 = jax.random.normal(ks[3], (c_hidden,), jnp.float32) * 0.05
    w2 = jax.random.normal(ks[4], (c_hidden, num_classes), jnp.float32) * 0.2
    b2 = jax.random.normal(ks[5], (num_classes,), jnp.float32) * 0.05

    # Fold embedding lookup + concat into the conv weight:
    #   E[c] = concat(emb_xy[c // n_ab], emb_ab[c % n_ab])   (combined token c)
    #   W1f[k*NC + c, :] = E[c] @ w1[k]
    c_idx = jnp.arange(num_classes)
    E = jnp.concatenate([emb_xy[c_idx // n_ab], emb_ab[c_idx % n_ab]], axis=1)
    w1f = jnp.einsum('nc,kch->knh', E, w1).reshape(ksize * num_classes,
                                                   c_hidden)

    # Pack all parameters into ONE lane-dense f32 slab (single VMEM DMA).
    assert c_hidden <= _W2_COL0 and _W2_COL0 + num_classes <= 128
    rows = max(ksize * num_classes + 1, c_hidden + 1)
    rows = ((rows + 7) // 8) * 8
    slab = jnp.zeros((rows, 128), jnp.float32)
    slab = slab.at[:ksize * num_classes, :c_hidden].set(w1f)
    slab = slab.at[ksize * num_classes, :c_hidden].set(b1)
    slab = slab.at[:c_hidden, _W2_COL0:_W2_COL0 + num_classes].set(w2)
    slab = slab.at[c_hidden, _W2_COL0:_W2_COL0 + num_classes].set(b2)
    return dict(slab=slab, xy_bits=xy_bits, ab_bits=ab_bits,
                c_hidden=c_hidden, ksize=ksize)


# ----------------------------------------------------------------------------
# Forward wrapper: packs the integer inputs, calls the kernel, decodes output.
# ----------------------------------------------------------------------------
def bell_cnn_forward(param_slab, xy_seq, ab_seq, xy, ab, *,
                     xy_bits, ab_bits, c_hidden, ksize):
    B, L = xy_seq.shape
    n_xy, n_ab = 2 ** xy_bits, 2 ** ab_bits
    K = ksize
    pad = (K - 1) // 2
    BL = B * L

    # --- pack ALL integer inputs into one (BL, K+2) int32 slab --------------
    comb = xy_seq.astype(jnp.int32) * n_ab + ab_seq.astype(jnp.int32)  # (B, L)
    cols = []
    for k in range(K):                       # static unroll (K small)
        s = k - pad                          # conv out[l] uses token[l + s]
        if s == 0:
            sh = comb
        elif s > 0:
            sh = jnp.concatenate(
                [comb[:, s:], jnp.full((B, s), -1, jnp.int32)], axis=1)
        else:
            sh = jnp.concatenate(
                [jnp.full((B, -s), -1, jnp.int32), comb[:, :s]], axis=1)
        cols.append(sh.reshape(BL, 1))
    xyab = jnp.concatenate([xy.astype(jnp.int32).reshape(B, 1),
                            ab.astype(jnp.int32).reshape(B, 1)], axis=1)
    tgt_cols = jnp.concatenate(
        [xyab, jnp.zeros((BL - B, 2), jnp.int32)], axis=0)   # (BL, 2)
    idx_packed = jnp.concatenate(cols + [tgt_cols], axis=1)  # (BL, K+2)

    kernel = functools.partial(fused_bell_kernel, B=B, L=L, n_xy=n_xy,
                               n_ab=n_ab, c_hid=c_hidden, K=K)
    vmem = pl.BlockSpec(memory_space=pltpu.MemorySpace.VMEM)
    out = pl.pallas_call(
        kernel,
        out_shape=jax.ShapeDtypeStruct((8, 128), jnp.float32),
        in_specs=[vmem, vmem],
        out_specs=vmem,
    )(idx_packed, param_slab)

    # --- decode the single lane-dense output tile ---------------------------
    loss = out[0, 0]
    sum_correct = out[0, 1].astype(jnp.int32)
    dist = out[1:3, :n_xy].astype(jnp.int32)   # row0: correct, row1: total
    info = {'distribution': dist}
    return sum_correct, loss, info


if __name__ == "__main__":
    key = jax.random.PRNGKey(0)
    kp, k1, k2, k3, k4 = jax.random.split(key, 5)

    B, L = 2, 8
    xy_bits, ab_bits = 3, 1
    c_hidden, ksize = 32, 3
    params = init_params(kp, xy_bits=xy_bits, ab_bits=ab_bits,
                         c_hidden=c_hidden, ksize=ksize)

    xy_seq = jax.random.randint(k1, (B, L), 0, 2 ** xy_bits, dtype=jnp.int32)
    ab_seq = jax.random.randint(k2, (B, L), 0, 2 ** ab_bits, dtype=jnp.int32)
    xy = jax.random.randint(k3, (B,), 0, 2 ** xy_bits, dtype=jnp.int32)
    ab = jax.random.randint(k4, (B,), 0, 2 ** ab_bits, dtype=jnp.int32)

    forward = jax.jit(functools.partial(
        bell_cnn_forward, xy_bits=xy_bits, ab_bits=ab_bits,
        c_hidden=c_hidden, ksize=ksize))
    sum_correct, loss, info = forward(params['slab'], xy_seq, ab_seq, xy, ab)
    jax.block_until_ready((sum_correct, loss, info['distribution']))
    print("KERNEL_OK")
</pallas_src>

<mosaic_0001>
module attributes {stable_mosaic.version = 11 : i64} {
  func.func @fused_bell_kernel(%arg0: memref<16x5xi32, #tpu.memory_space<vmem>>, %arg1: memref<56x128xf32, #tpu.memory_space<vmem>>, %arg2: memref<8x128xf32, #tpu.memory_space<vmem>>) attributes {dimension_semantics = [], scalar_prefetch = 0 : i64, scratch_operands = 0 : i64, tpu.core_type = #tpu.core_type<tc>} {
    %0 = tpu.iota {dimensions = array<i32: 1>} : vector<16x16xi32>
    %c0 = arith.constant 0 : index
    %c0_0 = arith.constant 0 : index
    %1 = vector.load %arg0[%c0, %c0_0] : memref<16x5xi32, #tpu.memory_space<vmem>>, vector<16x1xi32>
    %2 = vector.broadcast %1 : vector<16x1xi32> to vector<16x16xi32>
    %3 = arith.cmpi eq, %0, %2 : vector<16x16xi32>
    %4 = arith.extui %3 : vector<16x16xi1> to vector<16x16xi32>
    %5 = arith.sitofp %4 : vector<16x16xi32> to vector<16x16xf32>
    %c0_1 = arith.constant 0 : index
    %c1 = arith.constant 1 : index
    %6 = vector.load %arg0[%c0_1, %c1] : memref<16x5xi32, #tpu.memory_space<vmem>>, vector<16x1xi32>
    %7 = vector.broadcast %6 : vector<16x1xi32> to vector<16x16xi32>
    %8 = arith.cmpi eq, %0, %7 : vector<16x16xi32>
    %9 = arith.extui %8 : vector<16x16xi1> to vector<16x16xi32>
    %10 = arith.sitofp %9 : vector<16x16xi32> to vector<16x16xf32>
    %c0_2 = arith.constant 0 : index
    %c2 = arith.constant 2 : index
    %11 = vector.load %arg0[%c0_2, %c2] : memref<16x5xi32, #tpu.memory_space<vmem>>, vector<16x1xi32>
    %12 = vector.broadcast %11 : vector<16x1xi32> to vector<16x16xi32>
    %13 = arith.cmpi eq, %0, %12 : vector<16x16xi32>
    %14 = arith.extui %13 : vector<16x16xi1> to vector<16x16xi32>
    %15 = arith.sitofp %14 : vector<16x16xi32> to vector<16x16xf32>
    %16 = tpu.concatenate %5, %10, %15 in 1 : vector<16x16xf32>, vector<16x16xf32>, vector<16x16xf32> -> vector<16x48xf32>
    %c0_3 = arith.constant 0 : index
    %c0_4 = arith.constant 0 : index
    %17 = vector.load %arg1[%c0_3, %c0_4] : memref<56x128xf32, #tpu.memory_space<vmem>>, vector<48x32xf32>
    %c48 = arith.constant 48 : index
    %c0_5 = arith.constant 0 : index
    %18 = vector.load %arg1[%c48, %c0_5] : memref<56x128xf32, #tpu.memory_space<vmem>>, vector<1x32xf32>
    %cst = arith.constant dense<0.000000e+00> : vector<16x32xf32>
    %19 = tpu.matmul %16, %17, %cst {dimension_numbers = #tpu.dot_dimension_numbers<[1], [0], [0], [1], [0, 0, 1, 1], [], []>} : vector<16x48xf32>, vector<48x32xf32>, vector<16x32xf32> -> vector<16x32xf32>
    %20 = vector.broadcast %18 : vector<1x32xf32> to vector<16x32xf32>
    %21 = arith.addf %19, %20 : vector<16x32xf32>
    %cst_6 = arith.constant 0.000000e+00 : f32
    %22 = vector.broadcast %cst_6 : f32 to vector<16x32xf32>
    %23 = arith.maximumf %21, %22 : vector<16x32xf32>
    %24 = vector.extract_strided_slice %23 {offsets = [0, 0], sizes = [8, 32], strides = [1, 1]} : vector<16x32xf32> to vector<8x32xf32>
    %cst_7 = arith.constant dense<0.000000e+00> : vector<32xf32>
    %25 = vector.multi_reduction <add>, %24, %cst_7 [0] : vector<8x32xf32> to vector<32xf32>
    %26 = vector.shape_cast %25 : vector<32xf32> to vector<1x32xf32>
    %cst_8 = arith.constant 8.000000e+00 : f32
    %27 = vector.broadcast %cst_8 : f32 to vector<1x32xf32>
    %28 = arith.divf %26, %27 : vector<1x32xf32>
    %29 = vector.extract_strided_slice %23 {offsets = [8, 0], sizes = [8, 32], strides = [1, 1]} : vector<16x32xf32> to vector<8x32xf32>
    %cst_9 = arith.constant dense<0.000000e+00> : vector<32xf32>
    %30 = vector.multi_reduction <add>, %29, %cst_9 [0] : vector<8x32xf32> to vector<32xf32>
    %31 = vector.shape_cast %30 : vector<32xf32> to vector<1x32xf32>
    %cst_10 = arith.constant 8.000000e+00 : f32
    %32 = vector.broadcast %cst_10 : f32 to vector<1x32xf32>
    %33 = arith.divf %31, %32 : vector<1x32xf32>
    %34 = tpu.concatenate %28, %33 in 0 : vector<1x32xf32>, vector<1x32xf32> -> vector<2x32xf32>
    %c0_11 = arith.constant 0 : index
    %c64 = arith.constant 64 : index
    %35 = vector.load %arg1[%c0_11, %c64] : memref<56x128xf32, #tpu.memory_space<vmem>>, vector<32x16xf32>
    %c32 = arith.constant 32 : index
    %c64_12 = arith.constant 64 : index
    %36 = vector.load %arg1[%c32, %c64_12] : memref<56x128xf32, #tpu.memory_space<vmem>>, vector<1x16xf32>
    %cst_13 = arith.constant dense<0.000000e+00> : vector<2x16xf32>
    %37 = tpu.matmul %34, %35, %cst_13 {dimension_numbers = #tpu.dot_dimension_numbers<[1], [0], [0], [1], [0, 0, 1, 1], [], []>} : vector<2x32xf32>, vector<32x16xf32>, vector<2x16xf32> -> vector<2x16xf32>
    %38 = vector.broadcast %36 : vector<1x16xf32> to vector<2x16xf32>
    %39 = arith.addf %37, %38 : vector<2x16xf32>
    %c0_14 = arith.constant 0 : index
    %c3 = arith.constant 3 : index
    %40 = vector.load %arg0[%c0_14, %c3] : memref<16x5xi32, #tpu.memory_space<vmem>>, vector<2x1xi32>
    %c0_15 = arith.constant 0 : index
    %c4 = arith.constant 4 : index
    %41 = vector.load %arg0[%c0_15, %c4] : memref<16x5xi32, #tpu.memory_space<vmem>>, vector<2x1xi32>
    %42 = tpu.iota {dimensions = array<i32: 1>} : vector<2x16xi32>
    %c2_i32 = arith.constant 2 : i32
    %43 = vector.broadcast %c2_i32 : i32 to vector<2x1xi32>
    %44 = arith.muli %40, %43 : vector<2x1xi32>
    %45 = vector.broadcast %44 : vector<2x1xi32> to vector<2x16xi32>
    %46 = arith.subi %42, %45 : vector<2x16xi32>
    %c0_i32 = arith.constant 0 : i32
    %47 = vector.broadcast %c0_i32 : i32 to vector<2x16xi32>
    %48 = arith.cmpi sge, %46, %47 : vector<2x16xi32>
    %c2_i32_16 = arith.constant 2 : i32
    %49 = vector.broadcast %c2_i32_16 : i32 to vector<2x16xi32>
    %50 = arith.cmpi slt, %46, %49 : vector<2x16xi32>
    %51 = arith.andi %48, %50 : vector<2x16xi1>
    %cst_17 = arith.constant -1.000000e+30 : f32
    %52 = vector.broadcast %cst_17 : f32 to vector<2x16xf32>
    %53 = arith.select %51, %39, %52 : vector<2x16xi1>, vector<2x16xf32>
    %cst_18 = arith.constant dense<0xFF800000> : vector<2xf32>
    %54 = vector.multi_reduction <maximumf>, %53, %cst_18 [1] : vector<2x16xf32> to vector<2xf32>
    %55 = vector.shape_cast %54 : vector<2xf32> to vector<2x1xf32>
    %56 = vector.broadcast %55 : vector<2x1xf32> to vector<2x16xf32>
    %57 = arith.subf %53, %56 : vector<2x16xf32>
    %58 = math.exp %57 : vector<2x16xf32>
    %cst_19 = arith.constant dense<0.000000e+00> : vector<2xf32>
    %59 = vector.multi_reduction <add>, %58, %cst_19 [1] : vector<2x16xf32> to vector<2xf32>
    %60 = vector.shape_cast %59 : vector<2xf32> to vector<2x1xf32>
    %61 = math.log %60 : vector<2x1xf32>
    %62 = arith.addf %55, %61 : vector<2x1xf32>
    %63 = vector.broadcast %41 : vector<2x1xi32> to vector<2x16xi32>
    %64 = arith.cmpi eq, %46, %63 : vector<2x16xi32>
    %cst_20 = arith.constant 0.000000e+00 : f32
    %65 = vector.broadcast %cst_20 : f32 to vector<2x16xf32>
    %66 = arith.select %64, %39, %65 : vector<2x16xi1>, vector<2x16xf32>
    %cst_21 = arith.constant dense<0.000000e+00> : vector<2xf32>
    %67 = vector.multi_reduction <add>, %66, %cst_21 [1] : vector<2x16xf32> to vector<2xf32>
    %68 = vector.shape_cast %67 : vector<2xf32> to vector<2x1xf32>
    %69 = arith.subf %62, %68 : vector<2x1xf32>
    %70 = vector.shape_cast %69 : vector<2x1xf32> to vector<1x2x1xf32>
    %cst_22 = arith.constant dense<0.000000e+00> : vector<1xf32>
    %71 = vector.multi_reduction <add>, %70, %cst_22 [1, 2] : vector<1x2x1xf32> to vector<1xf32>
    %72 = vector.shape_cast %71 : vector<1xf32> to vector<1x1x1xf32>
    %73 = vector.extract %72[0, 0, 0] : f32 from vector<1x1x1xf32>
    %74 = vector.broadcast %73 : f32 to vector<1x1xf32>
    %cst_23 = arith.constant 2.000000e+00 : f32
    %75 = vector.broadcast %cst_23 : f32 to vector<1x1xf32>
    %76 = arith.divf %74, %75 : vector<1x1xf32>
    %77 = vector.broadcast %55 : vector<2x1xf32> to vector<2x16xf32>
    %78 = arith.cmpf oeq, %53, %77 : vector<2x16xf32>
    %79 = arith.andi %51, %78 : vector<2x16xi1>
    %c2_i32_24 = arith.constant 2 : i32
    %80 = vector.broadcast %c2_i32_24 : i32 to vector<2x16xi32>
    %81 = arith.select %79, %46, %80 : vector<2x16xi1>, vector<2x16xi32>
    %cst_25 = arith.constant dense<2147483647> : vector<2xi32>
    %82 = vector.multi_reduction <minsi>, %81, %cst_25 [1] : vector<2x16xi32> to vector<2xi32>
    %83 = vector.shape_cast %82 : vector<2xi32> to vector<2x1xi32>
    %84 = arith.cmpi eq, %83, %41 : vector<2x1xi32>
    %85 = arith.extui %84 : vector<2x1xi1> to vector<2x1xi32>
    %86 = arith.sitofp %85 : vector<2x1xi32> to vector<2x1xf32>
    %87 = vector.shape_cast %86 : vector<2x1xf32> to vector<1x2x1xf32>
    %cst_26 = arith.constant dense<0.000000e+00> : vector<1xf32>
    %88 = vector.multi_reduction <add>, %87, %cst_26 [1, 2] : vector<1x2x1xf32> to vector<1xf32>
    %89 = vector.shape_cast %88 : vector<1xf32> to vector<1x1x1xf32>
    %90 = vector.extract %89[0, 0, 0] : f32 from vector<1x1x1xf32>
    %91 = vector.broadcast %90 : f32 to vector<1x1xf32>
    %92 = tpu.iota {dimensions = array<i32: 1>} : vector<2x128xi32>
    %93 = vector.broadcast %40 : vector<2x1xi32> to vector<2x128xi32>
    %94 = arith.cmpi eq, %92, %93 : vector<2x128xi32>
    %95 = arith.extui %94 : vector<2x128xi1> to vector<2x128xi32>
    %96 = arith.sitofp %95 : vector<2x128xi32> to vector<2x128xf32>
    %97 = vector.broadcast %86 : vector<2x1xf32> to vector<2x128xf32>
    %98 = arith.mulf %96, %97 : vector<2x128xf32>
    %cst_27 = arith.constant dense<0.000000e+00> : vector<128xf32>
    %99 = vector.multi_reduction <add>, %98, %cst_27 [0] : vector<2x128xf32> to vector<128xf32>
    %100 = vector.shape_cast %99 : vector<128xf32> to vector<1x128xf32>
    %cst_28 = arith.constant dense<0.000000e+00> : vector<128xf32>
    %101 = vector.multi_reduction <add>, %96, %cst_28 [0] : vector<2x128xf32> to vector<128xf32>
    %102 = vector.shape_cast %101 : vector<128xf32> to vector<1x128xf32>
    %103 = tpu.iota {dimensions = array<i32: 1>} : vector<1x128xi32>
    %c0_i32_29 = arith.constant 0 : i32
    %104 = vector.broadcast %c0_i32_29 : i32 to vector<1x128xi32>
    %105 = arith.cmpi eq, %103, %104 : vector<1x128xi32>
    %c1_i32 = arith.constant 1 : i32
    %106 = vector.broadcast %c1_i32 : i32 to vector<1x128xi32>
    %107 = arith.cmpi eq, %103, %106 : vector<1x128xi32>
    %cst_30 = arith.constant 0.000000e+00 : f32
    %108 = vector.shape_cast %91 : vector<1x1xf32> to vector<1x1xf32>
    %109 = vector.broadcast %108 : vector<1x1xf32> to vector<1x128xf32>
    %110 = vector.broadcast %cst_30 : f32 to vector<1x128xf32>
    %111 = arith.select %107, %109, %110 : vector<1x128xi1>, vector<1x128xf32>
    %112 = vector.shape_cast %76 : vector<1x1xf32> to vector<1x1xf32>
    %113 = vector.broadcast %112 : vector<1x1xf32> to vector<1x128xf32>
    %114 = arith.select %105, %113, %111 : vector<1x128xi1>, vector<1x128xf32>
    %cst_31 = arith.constant 0.000000e+00 : f32
    %115 = vector.broadcast %cst_31 : f32 to vector<5x128xf32>
    %116 = tpu.concatenate %114, %100, %102, %115 in 0 : vector<1x128xf32>, vector<1x128xf32>, vector<1x128xf32>, vector<5x128xf32> -> vector<8x128xf32>
    %c0_32 = arith.constant 0 : index
    %c0_33 = arith.constant 0 : index
    %117 = vector.load %arg2[%c0_32, %c0_33] : memref<8x128xf32, #tpu.memory_space<vmem>>, vector<8x128xf32>
    tpu.vector_store %arg2[%c0_32, %c0_33], %116 {strides = array<i32>} : memref<8x128xf32, #tpu.memory_space<vmem>>, vector<8x128xf32>,
    return
  }
}

</mosaic_0001>

<bundles_post_ra>
// kernel: bell_cnn_forward.1
= control target key start
LH: loop header
LB: loop body
LE: loop exit
PB: predicated region body
PF: predicated region fallthrough
CT: control target
= control target key end

     0   :  { %v377_v0 = vmov 1   ;;  %v378_v3 = vmov 0   ;;  %v379_v4 = vmov 2   ;;  %v11_v5 = vlaneseq  ;;  %s381_s13 = smov 16   ;;  %s382_s14 = smov 32   ;;  %s488_s0 = inlined_call_operand.vmem [shape: s32[16,5], index: 0, kind: input, shape index: {}]   ;;  %s489_s1 = inlined_call_operand.vmem [shape: f32[56,128], index: 1, kind: input, shape index: {}]   ;;  %s490_s2 = inlined_call_operand.vmem [shape: f32[8,128], index: 2, kind: output, shape index: {}]  }
   0x1   :  { %349 = vset.pattern.permute.xlu1 %v377_v0  ;;  %347 = vset.pattern.permute.xlu0 %v377_v0  ;;  %v14_v1 = vld [vmem:[%s488_s0 + $0x8] sm:$0xff]  ;;  %v13_v2 = vld [vmem:[%s488_s0] sm:$0xff]  ;;  %v380_v9 = vmov 0.0   ;;  %v76_v18 = vld [vmem:[%s489_s1 + $0x18] sm:$0xff]  ;;  %s383_s27 = smov 64   ;;  %vm67_vm5 = vcmask 130048  }
   0x2   :  { %31 = vperm.xlu0 %347, %v14_v1   ;;  %28 = vperm.xlu1 %349, %v13_v2   ;;  %v410_v6 = vand.u32 127, %v11_v5  ;;  %v78_v16 = vld [vmem:[%s489_s1 + $0x28] sm:$0xff]  ;;  %v77_v17 = vld [vmem:[%s489_s1 + $0x20] sm:$0xff]  ;;  %v75_v19 = vld [vmem:[%s489_s1 + $0x10] sm:$0xff]  ;;  %vm70_vm6 = vcmask 261120   ;;  %vm81_vm7 = vcmask 392192  }
   0x3   :  { %351 = vset.pattern.permute.xlu2 %v378_v3  ;;  %325 = vmatpush.msra.mxu2 %v78_v16  ;;  %v74_v20 = vld [vmem:[%s489_s1 + $0x8] sm:$0xff]  ;;  %v73_v21 = vld [vmem:[%s489_s1] sm:$0xff]  ;;  %v352_v23 = vpack.i.bf16 %v75_v19, %v76_v18  ;;  %v384_v45 = vmov 8.0   ;;  %v385_v46 = vmov 3   ;;  %v386_v47 = vmov 4  }
   0x4   :  { %19 = vperm.xlu2 %351, %v14_v1   ;;  %98 = vmatpush.msra.mxu0 %v78_v16  ;;  %v357_v22 = vpack.i.bf16 %v73_v21, %v74_v20  ;;  %v449_v42 = vld [vmem:[%s488_s0] sm:$0x3]  ;;  %369 = vrcp.f32 %v384_v45  ;;  %v367_v48 = vld [vmem:[%s489_s1 + $0x30] ss:$0 sm:$0xff]  ;;  %vm136_vm10 = vcmask 1040384   ;;  %vm197_vm14 = vcmask 123904  }
   0x5   :  { %326 = vmatpush.msra.mxu2 %v77_v17  ;;  %v188_v43 = vmul.u32 2, %v449_v42  ;;  %v368_v44 = vld [vmem:[%s489_s1 + $0x20] ss:$0 sm:$0xff]  ;;  %s387_s1 = smov 124  }
   0x6   :  { %99 = vmatpush.msra.mxu0 %v77_v17 }
   0x7   :  { %327 = vmatpush.msra.mxu2 %v76_v18 }
   0x8   :  { %100 = vmatpush.msra.mxu0 %v76_v18 }
   0x9   :  { %328 = vmatpush.msra.mxu2 %v75_v19 }
   0xa   :  { %348 = vset.pattern.permute.xlu0 %v379_v4  ;;  %350 = vset.pattern.permute.xlu1 %v379_v4  ;;  %v370_v49 = vpop.eup %369 }
   0xb   :  { %43 = vperm.xlu0 %348, %v14_v1   ;;  %40 = vperm.xlu1 %350, %v13_v2   ;;  %v121_v52 = vmul.f32 8.0, %v370_v49  ;;  %vm125_vm9 = vweird.f32 %v370_v49 }
   0xc   :  { %101 = vmatpush.msra.mxu0 %v75_v19  ;;  %329 = vmatpush.msra.mxu2 %v74_v20 }
   0xd   :  { %v122_v58 = vsub.f32 1.0, %v121_v52 }
   0xe   :  { %102 = vmatpush.msra.mxu0 %v74_v20  ;;  %330 = vmatpush.msra.mxu2 %v73_v21 }
   0xf   :  { %v123_v63 = vmul.f32 %v370_v49, %v122_v58 }
  0x10   :  { %103 = vmatpush.msra.mxu0 %v73_v21 }
  0x11   :  { %v124_v4 = vadd.f32 %v370_v49, %v123_v63 }
  0x13   :  { %362 = vset.pattern.permute.xlu1 %v385_v46  ;;  %364 = vset.pattern.permute.xlu0 %v385_v46 }
  0x5e   :  { %v20_v24 = vpop.permute.xlu2 %19 }
  0x5f   :  { %vm22_vm4 = vcmp.eq.s32.totalorder %v410_v6, %v20_v24 }
  0x60   :  { %v315_v26 = vsel %vm22_vm4, 1.0, %v380_v9 }
  0x74   :  { %v32_v7 = vpop.permute.xlu0 %31  ;;  %v29_v8 = vpop.permute.xlu1 %28 }
  0x75   :  { %vm34_vm0 = vcmp.eq.s32.totalorder %v410_v6, %v32_v7  ;;  %vm33_vm1 = vcmp.eq.s32.totalorder %v410_v6, %v29_v8 }
  0x76   :  { %v317_v10 = vsel %vm34_vm0, 1.0, %v380_v9  ;;  %v316_v11 = vsel %vm33_vm1, 1.0, %v380_v9 }
  0x77   :  { %55 = vrot.lane.b32.xlu2 %v317_v10, %s381_s13  ;;  %53 = vrot.lane.b32.xlu0 %v316_v11, %s381_s13  ;;  %v126_v11 = vsel %vm125_vm9, %v370_v49, %v124_v4  ;;  %vm300_vm9 = vcmp.eq.s32.totalorder %v410_v6, 0 }
  0x7d   :  { %v44_v12 = vpop.permute.xlu0 %43  ;;  %v41_v14 = vpop.permute.xlu1 %40 }
  0x7e   :  { %vm46_vm2 = vcmp.eq.s32.totalorder %v410_v6, %v44_v12  ;;  %vm45_vm3 = vcmp.eq.s32.totalorder %v410_v6, %v41_v14 }
  0x7f   :  { %v319_v13 = vsel %vm46_vm2, 1.0, %v380_v9  ;;  %16 = vperm.xlu2 %351, %v13_v2   ;;  %v318_v15 = vsel %vm45_vm3, 1.0, %v380_v9  ;;  %358 = vrot.lane.b32.xlu0 %v357_v22, %s383_s27  ;;  %vm219_vm3 = vcmask 1024  }
  0x80   :  { %63 = vrot.lane.b32.xlu1 %v319_v13, %s382_s14 }
  0x87   :  { %353 = vrot.lane.b32.xlu2 %v352_v23, %s383_s27 }
  0x88   :  { %61 = vrot.lane.b32.xlu1 %v318_v15, %s382_s14  ;;  %363 = vset.pattern.permute.xlu2 %v386_v47 }
  0x8f   :  { %161 = vrot.lane.b32.xlu2 %v368_v44, %s383_s27 }
  0x90   :  { %190 = vperm.xlu1 %362, %v188_v43  }
  0x97   :  { %211 = vperm.xlu2 %363, %v449_v42  }
  0x98   :  { %365 = vset.pattern.permute.xlu1 %v386_v47 }
  0xd1   :  { %v56_v25 = vpop.permute.xlu2 %55 }
  0xd2   :  { %v69_v28 = vsel %vm67_vm5, %v315_v26, %v56_v25 }
  0xd9   :  { %v17_v27 = vpop.permute.xlu2 %16 }
  0xda   :  { %vm21_vm8 = vcmp.eq.s32.totalorder %v410_v6, %v17_v27 }
  0xdb   :  { %v314_v31 = vsel %vm21_vm8, 1.0, %v380_v9  ;;  %vm301_vm8 = vcmp.eq.s32.totalorder %v410_v6, 1 }
  0xe1   :  { %v354_v36 = vpop.permute.xlu2 %353 }
  0xe2   :  { %v355_v37 = vunpack.i.l.bf16 %v354_v36  ;;  %v356_v38 = vunpack.i.h.bf16 %v354_v36 }
  0xe4   :  { %179 = vmatpush.msra.mxu1 %v355_v37 }
  0xe6   :  { %180 = vmatpush.msra.mxu1 %v356_v38 }
  0xe9   :  { %v54_v32 = vpop.permute.xlu0 %53  ;;  %v162_v18 = vpop.permute.xlu2 %161 }
  0xea   :  { %v68_v33 = vsel %vm67_vm5, %v314_v31, %v54_v32 }
  0xf1   :  { %v359_v39 = vpop.permute.xlu0 %358 }
  0xf2   :  { %v64_v29 = vpop.permute.xlu1 %63  ;;  %v360_v40 = vunpack.i.l.bf16 %v359_v39  ;;  %v361_v41 = vunpack.i.h.bf16 %v359_v39 }
  0xf3   :  { %v72_v30 = vsel %vm70_vm6, %v69_v28, %v64_v29  ;;  %v212_v29 = vpop.permute.xlu2 %211 }
  0xf4   :  { %321 = vmatmul.msk.f32.vlgmr.msra.gmra.mxu2 %vm81_vm7, %v72_v30  ;;  %181 = vmatpush.msra.mxu1 %v360_v40 }
  0xf6   :  { %182 = vmatpush.msra.mxu1 %v361_v41 }
  0xfa   :  { %v62_v34 = vpop.permute.xlu1 %61 }
  0xfb   :  { %v71_v35 = vsel %vm70_vm6, %v68_v33, %v62_v34 }
  0xfc   :  { %320 = vmatmul.msk.f32.vlgmr.msra.gmra.mxu0 %vm81_vm7, %v71_v35 }
 0x102   :  { %v191_v16 = vpop.permute.xlu1 %190 }
 0x103   :  { %v192_v17 = vsub.s32 %v410_v6, %v191_v16 }
 0x105   :  { %vm193_vm11 = vcmp.ge.s32.totalorder %v192_v17, 0  ;;  %vm194_vm12 = vcmp.lt.s32.totalorder %v192_v17, 2  ;;  %vm213_vm1 = vcmp.eq.s32.totalorder %v192_v17, %v212_v29 }
 0x106   :  { %vm195_vm13 = vmand %vm193_vm11, %vm194_vm12  ;;  %vm307_vm11 = vcmask 1042432  }
 0x177   :  { %v108_v50 = vpop.f32.mrf.mxu2 }
 0x178   :  { %v109_v51 = vadd.f32 %v367_v48, %v108_v50 }
 0x179   :  { %v105_v53 = vpop.f32.mrf.mxu0 }
 0x17a   :  { %v112_v54 = vmax.f32 %v109_v51, 0.0  ;;  %v106_v55 = vadd.f32 %v367_v48, %v105_v53 }
 0x17c   :  { %v128_v56 = vsel %vm70_vm6, %v112_v54, 0.0  ;;  %v111_v57 = vmax.f32 %v106_v55, 0.0 }
 0x17d   :  { %v129_v59 = vrot.slane %v128_v56, 4 }
 0x17e   :  { %v113_v60 = vsel %vm70_vm6, %v111_v57, 0.0 }
 0x17f   :  { %v130_v61 = vadd.f32 %v129_v59, %v128_v56  ;;  %v114_v62 = vrot.slane %v113_v60, 4 }
 0x181   :  { %v131_v0 = vrot.slane %v130_v61, 2  ;;  %v115_v1 = vadd.f32 %v114_v62, %v113_v60 }
 0x183   :  { %v132_v2 = vadd.f32 %v131_v0, %v130_v61  ;;  %v116_v3 = vrot.slane %v115_v1, 2 }
 0x185   :  { %v133_v5 = vrot.slane %v132_v2, 1  ;;  %v117_v7 = vadd.f32 %v116_v3, %v115_v1 }
 0x187   :  { %v134_v8 = vadd.f32 %v133_v5, %v132_v2  ;;  %v118_v10 = vrot.slane %v117_v7, 1 }
 0x189   :  { %v119_v12 = vadd.f32 %v118_v10, %v117_v7  ;;  %v135_v14 = vmul.f32 %v134_v8, %v126_v11  ;;  %v388_v8 = vmov 2.0  }
 0x18b   :  { %v127_v13 = vmul.f32 %v126_v11, %v119_v12 }
 0x18d   :  { %v137_v15 = vsel %vm136_vm10, %v127_v13, %v135_v14 }
 0x18e   :  { %322 = vmatmul.msk.f32.vlgmr.msra.gmra.mxu1 %vm70_vm6, %v137_v15  ;;  %vm285_vm6 = vcmask 1041408  }
 0x20b   :  { %v184_v19 = vpop.f32.mrf.mxu1 }
 0x20c   :  { %v185_v20 = vadd.f32 %v184_v19, %v162_v18 }
 0x20e   :  { %v196_v21 = vsel %vm195_vm13, %v185_v20, -1e+30  ;;  %v214_v33 = vsel %vm213_vm1, %v185_v20, 0.0 }
 0x20f   :  { %v198_v22 = vsel %vm197_vm14, %v196_v21, -inf  ;;  %v215_v34 = vsel %vm197_vm14, %v214_v33, 0.0 }
 0x210   :  { %199 = vmax.xlane.f32.xlu0 %v198_v22 }
 0x283   :  { %v200_v23 = vpop.xlane.xlu0 %199 }
 0x284   :  { %v201_v24 = vsub.f32 %v196_v21, %v200_v23  ;;  %vm239_vm15 = vcmp.eq.f32.partialorder %v196_v21, %v200_v23 }
 0x285   :  { %vm240_vm0 = vmand %vm195_vm13, %vm239_vm15 }
 0x286   :  { %v202_v25 = vmul.f32 1.442695, %v201_v24  ;;  %v241_v26 = vsel %vm240_vm0, %v192_v17, 2 }
 0x287   :  { %v242_v27 = vsel %vm197_vm14, %v241_v26, 2147483647 }
 0x288   :  { %371 = vpow2.f32 %v202_v25  ;;  %v244_v28 = vshra.s32 %v242_v27, 16  ;;  %v243_v35 = vand.u32 65535, %v242_v27 }
 0x28a   :  { %v246_v30 = vcvt.s32.f32 %v244_v28  ;;  %v245_v37 = vcvt.s32.f32 %v243_v35 }
 0x28c   :  { %247 = vmin.xlane.f32.xlu1 %v246_v30 }
 0x28e   :  { %v372_v31 = vpop.eup %371 }
 0x28f   :  { %v204_v32 = vsel %vm197_vm14, %v372_v31, 0.0 }
 0x290   :  { %205 = vadd.xlane.f32.xlu0 %v204_v32 }
 0x294   :  { %216 = vadd.xlane.f32.xlu1 %v215_v34 }
 0x2ff   :  { %v248_v36 = vpop.xlane.xlu1 %247 }
 0x300   :  { %vm249_vm2 = vcmp.eq.f32.partialorder %v246_v30, %v248_v36  ;;  %v254_v48 = vcvt.f32.s32 %v248_v36 }
 0x301   :  { %v250_v38 = vsel %vm249_vm2, %v245_v37, inf }
 0x302   :  { %251 = vmin.xlane.f32.xlu2 %v250_v38  ;;  %v255_v50 = vshll.u32 %v254_v48, 16 }
 0x303   :  { %v206_v39 = vpop.xlane.xlu0 %205 }
 0x304   :  { %373 = vlog2.f32 %v206_v39 }
 0x305   :  { %375 = vrcp.f32 %v388_v8 }
 0x307   :  { %v217_v44 = vpop.xlane.xlu1 %216 }
 0x30a   :  { %v374_v40 = vpop.eup %373 }
 0x30b   :  { %v208_v41 = vmul.f32 0.6931472, %v374_v40  ;;  %v376_v11 = vpop.eup %375 }
 0x30c   :  { %v232_v14 = vmul.f32 2.0, %v376_v11  ;;  %vm236_vm7 = vweird.f32 %v376_v11 }
 0x30d   :  { %v209_v43 = vadd.f32 %v208_v41, %v200_v23 }
 0x30e   :  { %v233_v17 = vsub.f32 1.0, %v232_v14 }
 0x30f   :  { %v218_v45 = vsub.f32 %v209_v43, %v217_v44 }
 0x310   :  { %v234_v20 = vmul.f32 %v376_v11, %v233_v17 }
 0x311   :  { %v220_v46 = vsel %vm219_vm3, %v218_v45, 0.0 }
 0x312   :  { %221 = vadd.xlane.f32.xlu0 %v220_v46  ;;  %v235_v23 = vadd.f32 %v376_v11, %v234_v20 }
 0x314   :  { %v237_v26 = vsel %vm236_vm7, %v376_v11, %v235_v23 }
 0x326   :  { %275 = vperm.xlu0 %364, %v449_v42  }
 0x32e   :  { %366 = vset.pattern.permute.xlu0 %v386_v47 }
 0x375   :  { %v252_v49 = vpop.xlane.xlu2 %251 }
 0x376   :  { %v253_v51 = vcvt.f32.s32 %v252_v49 }
 0x378   :  { %v256_v52 = vadd.s32 %v255_v50, %v253_v51 }
 0x37a   :  { %vm257_vm4 = vcmp.eq.s32.totalorder %v256_v52, %v449_v42 }
 0x37b   :  { %v323_v53 = vsel %vm257_vm4, 1.0, %v380_v9 }
 0x37c   :  { %261 = vrot.lane.b32.xlu2 %v323_v53, %s387_s1 }
 0x385   :  { %v222_v54 = vpop.xlane.xlu0 %221 }
 0x386   :  { %v223_v55 = vrot.slane %v222_v54, 4 }
 0x388   :  { %v224_v56 = vadd.f32 %v223_v55, %v222_v54 }
 0x38a   :  { %v225_v57 = vrot.slane %v224_v56, 2 }
 0x38c   :  { %v226_v58 = vadd.f32 %v225_v57, %v224_v56 }
 0x38e   :  { %v227_v59 = vrot.slane %v226_v58, 1 }
 0x390   :  { %v228_v60 = vadd.f32 %v227_v59, %v226_v58 }
 0x392   :  { %331 = vpush %v228_v60 }
 0x398   :  { %v276_v4 = vpop.permute.xlu0 %275 }
 0x399   :  { %vm277_vm5 = vcmp.eq.s32.totalorder %v410_v6, %v276_v4 }
 0x39a   :  { %v324_v7 = vsel %vm277_vm5, 1.0, %v380_v9 }
 0x39b   :  { %v293_v13 = vsel %vm285_vm6, %v324_v7, 0.0 }
 0x39c   :  { %v294_v16 = vrot.slane %v293_v13, 4 }
 0x39e   :  { %v295_v19 = vadd.f32 %v294_v16, %v293_v13 }
 0x3a0   :  { %v296_v22 = vrot.slane %v295_v19, 2 }
 0x3a2   :  { %v297_v24 = vadd.f32 %v296_v22, %v295_v19 }
 0x3a4   :  { %v298_v28 = vrot.slane %v297_v24, 1 }
 0x3a6   :  { %v299_v33 = vadd.f32 %v298_v28, %v297_v24 }
 0x3c3   :  { %s332_s5 = spop %331 }
 0x3c4   :  { %v230_v25 = vstv %s332_s5 }
 0x3c5   :  { %v238_v29 = vmul.f32 %v237_v26, %v230_v25 }
 0x3d6   :  { %v262_v47 = vpop.permute.xlu2 %261 }
 0x3d7   :  { %v264_v61 = vsel %vm219_vm3, %v262_v47, 0.0 }
 0x3d8   :  { %265 = vadd.xlane.f32.xlu1 %v264_v61 }
 0x3f1   :  { %281 = vperm.xlu1 %365, %v323_v53  }
 0x44b   :  { %v266_v62 = vpop.xlane.xlu1 %265 }
 0x44c   :  { %v267_v63 = vrot.slane %v266_v62, 4 }
 0x44e   :  { %v268_v42 = vadd.f32 %v267_v63, %v266_v62 }
 0x450   :  { %v269_v0 = vrot.slane %v268_v42, 2 }
 0x452   :  { %v270_v1 = vadd.f32 %v269_v0, %v268_v42 }
 0x454   :  { %v271_v2 = vrot.slane %v270_v1, 1 }
 0x456   :  { %v272_v3 = vadd.f32 %v271_v2, %v270_v1 }
 0x458   :  { %333 = vpush %v272_v3 }
 0x463   :  { %v282_v5 = vpop.permute.xlu1 %281 }
 0x464   :  { %v284_v10 = vmul.f32 %v324_v7, %v282_v5 }
 0x466   :  { %v286_v12 = vsel %vm285_vm6, %v284_v10, 0.0 }
 0x467   :  { %v287_v15 = vrot.slane %v286_v12, 4 }
 0x469   :  { %v288_v18 = vadd.f32 %v287_v15, %v286_v12 }
 0x46b   :  { %v289_v21 = vrot.slane %v288_v18, 2 }
 0x46d   :  { %v290_v9 = vadd.f32 %v289_v21, %v288_v18 }
 0x46f   :  { %v291_v27 = vrot.slane %v290_v9, 1 }
 0x471   :  { %v292_v31 = vadd.f32 %v291_v27, %v290_v9 }
 0x489   :  { %s334_s6 = spop %333 }
 0x48a   :  { %v302_v30 = vstv %s334_s6 }
 0x48b   :  { %v303_v32 = vsel %vm301_vm8, %v302_v30, 0.0 }
 0x48c   :  { %v304_v34 = vsel %vm300_vm9, %v238_v29, %v303_v32 }
 0x48d   :  { %v305_v35 = vsel %vm136_vm10, %v304_v34, %v292_v31 }
 0x48e   :  { %v306_v36 = vsel %vm285_vm6, %v305_v35, %v299_v33 }
 0x48f   :  { %v308_v37 = vsel %vm307_vm11, %v306_v36, 0.0 }
 0x490   :  { %309 = vst [vmem:[%s490_s2] sm:$0xff] %v308_v37 }

</bundles_post_ra>
